<compile_context>
chip_gen: v6e
topology: v6e:2x2x1
jax: 0.10.0
libtpu: 0.0.40
codegen_flags: <defaults>
</compile_context>

<pallas_src>
import string

import jax
import jax.numpy as jnp
from jax.experimental import pallas as pl
from jax.experimental.pallas import tpu as pltpu

ALL_LETTERS = string.ascii_letters + " .,;'"
N_LETTERS = len(ALL_LETTERS)          # 57  (input_size)
N_HIDDEN = 128                        # hidden_size
N_OUTPUT = 18                         # output_size (e.g. 18 language classes)
N_OUT_PAD = 128                       # logits padded to a full lane tile
N_FUSED = N_HIDDEN + N_OUT_PAD        # 256: fused [i2h | padded i2o] output dim


def _rnn_seq_kernel(x_ref, h0_ref, wx_ref, wh_ref, b_ref, out_ref, hid_ref):
    """One grid step == one timestep; hid_ref is the persistent hidden state."""
    t = pl.program_id(0)

    @pl.when(t == 0)
    def _():
        hid_ref[...] = h0_ref[...]

    x = x_ref[0]                       # (B, N_LETTERS)  current one-hot inputs
    h = hid_ref[...]                   # (B, N_HIDDEN)   hidden from prev step

    # Fused matmul: y[:, :128] -> new hidden, y[:, 128:] -> padded logits.
    y = (jnp.dot(x, wx_ref[...], preferred_element_type=jnp.float32)
         + jnp.dot(h, wh_ref[...], preferred_element_type=jnp.float32)
         + b_ref[...])                 # (B, N_FUSED)

    new_h = y[:, :N_HIDDEN]
    logits = y[:, N_HIDDEN:]           # (B, N_OUT_PAD)

    # Mask pad lanes so they do not affect max / sum of the log-softmax.
    lane = jax.lax.broadcasted_iota(jnp.int32, logits.shape, 1)
    logits = jnp.where(lane < N_OUTPUT, logits, jnp.float32(-1e30))

    m = jnp.max(logits, axis=-1, keepdims=True)
    shifted = logits - m
    lse = jnp.log(jnp.sum(jnp.exp(shifted), axis=-1, keepdims=True))

    out_ref[0] = shifted - lse         # lane-dense (B, 128) store per step
    hid_ref[...] = new_h               # carried to next grid step


def rnn_forward_sequence(x_seq, h0, w_i2h, b_i2h, w_i2o, b_i2o):
    """Run the RNN cell over a whole sequence in a single pallas_call.

    x_seq: (T, B, N_LETTERS) f32 one-hot inputs
    h0:    (B, N_HIDDEN)     f32 initial hidden
    w_i2h: (N_LETTERS + N_HIDDEN, N_HIDDEN)   (stored as in_features x out_features)
    b_i2h: (1, N_HIDDEN)
    w_i2o: (N_LETTERS + N_HIDDEN, N_OUTPUT)
    b_i2o: (1, N_OUTPUT)
    returns (log_probs (T, B, N_OUTPUT), final_hidden (B, N_HIDDEN))
    """
    T, B, _ = x_seq.shape
    pad = N_OUT_PAD - N_OUTPUT

    # One-time weight plumbing (outside the kernel, under jit):
    # split rows by input block (x | h) and fuse i2h / padded-i2o along the
    # output dim so the kernel does a single 256-wide MXU pass per step.
    wx = jnp.concatenate(
        [w_i2h[:N_LETTERS], jnp.pad(w_i2o[:N_LETTERS], ((0, 0), (0, pad)))],
        axis=1)                                          # (57, 256)
    wh = jnp.concatenate(
        [w_i2h[N_LETTERS:], jnp.pad(w_i2o[N_LETTERS:], ((0, 0), (0, pad)))],
        axis=1)                                          # (128, 256)
    b = jnp.concatenate(
        [b_i2h, jnp.pad(b_i2o, ((0, 0), (0, pad)))], axis=1)   # (1, 256)

    log_probs_pad, h_final = pl.pallas_call(
        _rnn_seq_kernel,
        grid=(T,),
        out_shape=(
            jax.ShapeDtypeStruct((T, B, N_OUT_PAD), jnp.float32),
            jax.ShapeDtypeStruct((B, N_HIDDEN), jnp.float32),
        ),
        in_specs=[
            pl.BlockSpec((1, B, N_LETTERS), lambda t: (t, 0, 0)),  # x_t
            pl.BlockSpec((B, N_HIDDEN), lambda t: (0, 0)),         # h0
            pl.BlockSpec((N_LETTERS, N_FUSED), lambda t: (0, 0)),  # Wx (resident)
            pl.BlockSpec((N_HIDDEN, N_FUSED), lambda t: (0, 0)),   # Wh (resident)
            pl.BlockSpec((1, N_FUSED), lambda t: (0, 0)),          # bias (resident)
        ],
        out_specs=(
            pl.BlockSpec((1, B, N_OUT_PAD), lambda t: (t, 0, 0)),  # per-step log p
            pl.BlockSpec((B, N_HIDDEN), lambda t: (0, 0)),         # hidden (resident)
        ),
        compiler_params=pltpu.CompilerParams(
            dimension_semantics=("arbitrary",)),   # time recurrence is sequential
    )(x_seq, h0, wx, wh, b)

    return log_probs_pad[:, :, :N_OUTPUT], h_final


# ---------------- helpers mirroring the PyTorch script ----------------

def letter_to_index(letter):
    return ALL_LETTERS.find(letter)


def line_to_indices(line):
    return jnp.array([letter_to_index(c) for c in line], dtype=jnp.int32)


def init_params(key):
    """Deterministic Kaiming-uniform-ish init (synthetic, not a checkpoint)."""
    in_feats = N_LETTERS + N_HIDDEN
    k1, k2, k3, k4 = jax.random.split(key, 4)
    bound = 1.0 / jnp.sqrt(in_feats)
    w_i2h = jax.random.uniform(k1, (in_feats, N_HIDDEN), jnp.float32, -bound, bound)
    b_i2h = jax.random.uniform(k2, (1, N_HIDDEN), jnp.float32, -bound, bound)
    w_i2o = jax.random.uniform(k3, (in_feats, N_OUTPUT), jnp.float32, -bound, bound)
    b_i2o = jax.random.uniform(k4, (1, N_OUTPUT), jnp.float32, -bound, bound)
    return w_i2h, b_i2h, w_i2o, b_i2o


def rnn_reference(x_seq, h0, w_i2h, b_i2h, w_i2o, b_i2o):
    """Pure-JAX reference matching the PyTorch forward exactly."""
    def step(h, x):
        comb = jnp.concatenate([x, h], axis=1)
        new_h = comb @ w_i2h + b_i2h
        logits = comb @ w_i2o + b_i2o
        return new_h, jax.nn.log_softmax(logits, axis=1)
    h_final, outs = jax.lax.scan(step, h0, x_seq)
    return outs, h_final


if __name__ == "__main__":
    key = jax.random.PRNGKey(0)
    w_i2h, b_i2h, w_i2o, b_i2o = init_params(key)

    # Batch of 8 six-letter names (sublane-friendly batch), one fused call.
    names = ["Albert", "Elenor", "Hannah", "Marcus",
             "Sophia", "Walter", "Ingrid", "Teresa"]
    T, B = len(names[0]), len(names)
    idx = jnp.stack([line_to_indices(n) for n in names], axis=1)   # (T, B)
    x_seq = jax.nn.one_hot(idx, N_LETTERS, dtype=jnp.float32)      # (T, B, 57)
    h0 = jnp.zeros((B, N_HIDDEN), dtype=jnp.float32)

    fwd = jax.jit(rnn_forward_sequence)
    log_probs, h_final = fwd(x_seq, h0, w_i2h, b_i2h, w_i2o, b_i2o)
    log_probs = jax.block_until_ready(log_probs)
    h_final = jax.block_until_ready(h_final)

    assert log_probs.shape == (T, B, N_OUTPUT)
    assert h_final.shape == (B, N_HIDDEN)

    # sanity: probabilities per row sum to ~1
    assert bool(jnp.allclose(jnp.sum(jnp.exp(log_probs), axis=-1), 1.0, atol=1e-4))

    # numerics vs. pure-JAX reference (tolerant of TPU matmul precision)
    ref_out, ref_h = rnn_reference(x_seq, h0, w_i2h, b_i2h, w_i2o, b_i2o)
    assert bool(jnp.allclose(log_probs, ref_out, atol=1e-2, rtol=1e-2))
    assert bool(jnp.allclose(h_final, ref_h, atol=1e-2, rtol=1e-2))

    print("KERNEL_OK")
</pallas_src>

<mosaic_0001>
module attributes {stable_mosaic.version = 11 : i64} {
  func.func @_rnn_seq_kernel(%arg0: i32, %arg1: memref<1x8x57xf32, #tpu.memory_space<vmem>>, %arg2: memref<8x128xf32, #tpu.memory_space<vmem>>, %arg3: memref<57x256xf32, #tpu.memory_space<vmem>>, %arg4: memref<128x256xf32, #tpu.memory_space<vmem>>, %arg5: memref<1x256xf32, #tpu.memory_space<vmem>>, %arg6: memref<1x8x128xf32, #tpu.memory_space<vmem>>, %arg7: memref<8x128xf32, #tpu.memory_space<vmem>>) attributes {dimension_semantics = [#tpu.dimension_semantics<arbitrary>], iteration_bounds = array<i64: 6>, scalar_prefetch = 0 : i64, scratch_operands = 0 : i64, tpu.core_type = #tpu.core_type<tc>, window_params = [{transform_indices = @transform_0, window_bounds = array<i64: 1, 8, 57>}, {pipeline_mode = #tpu.pipeline_mode<synchronous>, transform_indices = @transform_1, window_bounds = array<i64: 8, 128>}, {pipeline_mode = #tpu.pipeline_mode<synchronous>, transform_indices = @transform_2, window_bounds = array<i64: 57, 256>}, {pipeline_mode = #tpu.pipeline_mode<synchronous>, transform_indices = @transform_3, window_bounds = array<i64: 128, 256>}, {pipeline_mode = #tpu.pipeline_mode<synchronous>, transform_indices = @transform_4, window_bounds = array<i64: 1, 256>}, {transform_indices = @transform_5, window_bounds = array<i64: 1, 8, 128>}, {pipeline_mode = #tpu.pipeline_mode<synchronous>, transform_indices = @transform_6, window_bounds = array<i64: 8, 128>}]} {
    %c0_i32 = arith.constant 0 : i32
    %0 = arith.cmpi eq, %arg0, %c0_i32 : i32
    %1 = arith.extui %0 : i1 to i32
    %c0_i32_0 = arith.constant 0 : i32
    %2 = arith.cmpi ne, %1, %c0_i32_0 : i32
    scf.if %2 {
      %c0_20 = arith.constant 0 : index
      %c0_21 = arith.constant 0 : index
      %35 = vector.load %arg2[%c0_20, %c0_21] : memref<8x128xf32, #tpu.memory_space<vmem>>, vector<8x128xf32>
      %c0_22 = arith.constant 0 : index
      %c0_23 = arith.constant 0 : index
      %36 = vector.load %arg7[%c0_22, %c0_23] : memref<8x128xf32, #tpu.memory_space<vmem>>, vector<8x128xf32>
      tpu.vector_store %arg7[%c0_22, %c0_23], %35 {strides = array<i32>} : memref<8x128xf32, #tpu.memory_space<vmem>>, vector<8x128xf32>,
    } else {
    }
    %c0 = arith.constant 0 : index
    %c0_1 = arith.constant 0 : index
    %c0_2 = arith.constant 0 : index
    %3 = vector.load %arg1[%c0, %c0_1, %c0_2] : memref<1x8x57xf32, #tpu.memory_space<vmem>>, vector<1x8x57xf32>
    %4 = vector.shape_cast %3 : vector<1x8x57xf32> to vector<8x57xf32>
    %c0_3 = arith.constant 0 : index
    %c0_4 = arith.constant 0 : index
    %5 = vector.load %arg7[%c0_3, %c0_4] : memref<8x128xf32, #tpu.memory_space<vmem>>, vector<8x128xf32>
    %c0_5 = arith.constant 0 : index
    %c0_6 = arith.constant 0 : index
    %6 = vector.load %arg3[%c0_5, %c0_6] : memref<57x256xf32, #tpu.memory_space<vmem>>, vector<57x256xf32>
    %cst = arith.constant dense<0.000000e+00> : vector<8x256xf32>
    %7 = tpu.matmul %4, %6, %cst {dimension_numbers = #tpu.dot_dimension_numbers<[1], [0], [0], [1], [0, 0, 1, 1], [], []>} : vector<8x57xf32>, vector<57x256xf32>, vector<8x256xf32> -> vector<8x256xf32>
    %c0_7 = arith.constant 0 : index
    %c0_8 = arith.constant 0 : index
    %8 = vector.load %arg4[%c0_7, %c0_8] : memref<128x256xf32, #tpu.memory_space<vmem>>, vector<128x256xf32>
    %cst_9 = arith.constant dense<0.000000e+00> : vector<8x256xf32>
    %9 = tpu.matmul %5, %8, %cst_9 {dimension_numbers = #tpu.dot_dimension_numbers<[1], [0], [0], [1], [0, 0, 1, 1], [], []>} : vector<8x128xf32>, vector<128x256xf32>, vector<8x256xf32> -> vector<8x256xf32>
    %10 = arith.addf %7, %9 : vector<8x256xf32>
    %c0_10 = arith.constant 0 : index
    %c0_11 = arith.constant 0 : index
    %11 = vector.load %arg5[%c0_10, %c0_11] : memref<1x256xf32, #tpu.memory_space<vmem>>, vector<1x256xf32>
    %12 = vector.broadcast %11 : vector<1x256xf32> to vector<8x256xf32>
    %13 = arith.addf %10, %12 : vector<8x256xf32>
    %14 = vector.extract_strided_slice %13 {offsets = [0, 0], sizes = [8, 128], strides = [1, 1]} : vector<8x256xf32> to vector<8x128xf32>
    %15 = vector.extract_strided_slice %13 {offsets = [0, 128], sizes = [8, 128], strides = [1, 1]} : vector<8x256xf32> to vector<8x128xf32>
    %16 = tpu.iota {dimensions = array<i32: 1>} : vector<8x128xi32>
    %c18_i32 = arith.constant 18 : i32
    %17 = vector.broadcast %c18_i32 : i32 to vector<8x128xi32>
    %18 = arith.cmpi slt, %16, %17 : vector<8x128xi32>
    %cst_12 = arith.constant -1.000000e+30 : f32
    %19 = vector.broadcast %cst_12 : f32 to vector<8x128xf32>
    %20 = arith.select %18, %15, %19 : vector<8x128xi1>, vector<8x128xf32>
    %cst_13 = arith.constant dense<0xFF800000> : vector<8xf32>
    %21 = vector.multi_reduction <maximumf>, %20, %cst_13 [1] : vector<8x128xf32> to vector<8xf32>
    %22 = vector.shape_cast %21 : vector<8xf32> to vector<8x1xf32>
    %23 = vector.broadcast %22 : vector<8x1xf32> to vector<8x128xf32>
    %24 = arith.subf %20, %23 : vector<8x128xf32>
    %25 = math.exp %24 : vector<8x128xf32>
    %cst_14 = arith.constant dense<0.000000e+00> : vector<8xf32>
    %26 = vector.multi_reduction <add>, %25, %cst_14 [1] : vector<8x128xf32> to vector<8xf32>
    %27 = vector.shape_cast %26 : vector<8xf32> to vector<8x1xf32>
    %28 = math.log %27 : vector<8x1xf32>
    %29 = vector.broadcast %28 : vector<8x1xf32> to vector<8x128xf32>
    %30 = arith.subf %24, %29 : vector<8x128xf32>
    %c0_15 = arith.constant 0 : index
    %c0_16 = arith.constant 0 : index
    %c0_17 = arith.constant 0 : index
    %31 = vector.load %arg6[%c0_15, %c0_16, %c0_17] : memref<1x8x128xf32, #tpu.memory_space<vmem>>, vector<1x8x128xf32>
    %32 = vector.shape_cast %31 : vector<1x8x128xf32> to vector<8x128xf32>
    %33 = vector.shape_cast %30 : vector<8x128xf32> to vector<1x8x128xf32>
    tpu.vector_store %arg6[%c0_15, %c0_16, %c0_17], %33 {strides = array<i32>} : memref<1x8x128xf32, #tpu.memory_space<vmem>>, vector<1x8x128xf32>,
    %c0_18 = arith.constant 0 : index
    %c0_19 = arith.constant 0 : index
    %34 = vector.load %arg7[%c0_18, %c0_19] : memref<8x128xf32, #tpu.memory_space<vmem>>, vector<8x128xf32>
    tpu.vector_store %arg7[%c0_18, %c0_19], %14 {strides = array<i32>} : memref<8x128xf32, #tpu.memory_space<vmem>>, vector<8x128xf32>,
    return
  }
  func.func @transform_0(%arg0: i32) -> (i32, i32, i32) {
    %c0_i32 = arith.constant 0 : i32
    %c0_i32_0 = arith.constant 0 : i32
    %c0_i32_1 = arith.constant 0 : i32
    return %arg0, %c0_i32, %c0_i32_0 : i32, i32, i32
  }
  func.func @transform_1(%arg0: i32) -> (i32, i32) {
    %c0_i32 = arith.constant 0 : i32
    %c0_i32_0 = arith.constant 0 : i32
    %c0_i32_1 = arith.constant 0 : i32
    return %c0_i32, %c0_i32_0 : i32, i32
  }
  func.func @transform_2(%arg0: i32) -> (i32, i32) {
    %c0_i32 = arith.constant 0 : i32
    %c0_i32_0 = arith.constant 0 : i32
    %c0_i32_1 = arith.constant 0 : i32
    return %c0_i32, %c0_i32_0 : i32, i32
  }
  func.func @transform_3(%arg0: i32) -> (i32, i32) {
    %c0_i32 = arith.constant 0 : i32
    %c0_i32_0 = arith.constant 0 : i32
    %c0_i32_1 = arith.constant 0 : i32
    return %c0_i32, %c0_i32_0 : i32, i32
  }
  func.func @transform_4(%arg0: i32) -> (i32, i32) {
    %c0_i32 = arith.constant 0 : i32
    %c0_i32_0 = arith.constant 0 : i32
    %c0_i32_1 = arith.constant 0 : i32
    return %c0_i32, %c0_i32_0 : i32, i32
  }
  func.func @transform_5(%arg0: i32) -> (i32, i32, i32) {
    %c0_i32 = arith.constant 0 : i32
    %c0_i32_0 = arith.constant 0 : i32
    %c0_i32_1 = arith.constant 0 : i32
    return %arg0, %c0_i32, %c0_i32_0 : i32, i32, i32
  }
  func.func @transform_6(%arg0: i32) -> (i32, i32) {
    %c0_i32 = arith.constant 0 : i32
    %c0_i32_0 = arith.constant 0 : i32
    %c0_i32_1 = arith.constant 0 : i32
    return %c0_i32, %c0_i32_0 : i32, i32
  }
}

</mosaic_0001>

<bundles_post_ra>
// kernel: rnn_forward_sequence.1
= control target key start
LH: loop header
LB: loop body
LE: loop exit
PB: predicated region body
PF: predicated region fallthrough
CT: control target
= control target key end

     0   :  { %12 = vsyncpa [#allocation3], 0  ;;  %s1040_s0 = inlined_call_operand.vmem [shape: f32[6,8,57], index: 0, kind: input, shape index: {}]   ;;  %s1041_s1 = inlined_call_operand.vmem [shape: f32[8,128], index: 1, kind: input, shape index: {}]   ;;  %s1042_s2 = inlined_call_operand.vmem [shape: f32[57,256], index: 2, kind: input, shape index: {}]   ;;  %s1043_s3 = inlined_call_operand.vmem [shape: f32[128,256], index: 3, kind: input, shape index: {}]   ;;  %s1044_s4 = inlined_call_operand.vmem [shape: f32[1,256], index: 4, kind: input, shape index: {}]   ;;  %s1045_s5 = inlined_call_operand.hbm [shape: f32[6,8,128], index: 5, kind: output, shape index: {0}]   ;;  %s1046_s6 = inlined_call_operand.hbm [shape: f32[8,128], index: 6, kind: output, shape index: {1}]  }
   0x1   :  { %14 = vsyncpa [#allocation3 + $0x1], 0 }
   0x2   :  { %15 = vsyncpa [#allocation5], 0  ;;  %s775_s21 = smov 0   ;;  %s777_s22 = smov 0  }
   0x3   :  { %s779_s23 = smov 0   ;;  %s781_s24 = smov 0  }
   0x4 LB: > { %s796_s25 = sadd.s32 4294967295, %s735_s24   ;;  %s580_s26 = sadd.s32 4294967294, %s735_s24   ;;  %s735_s24 = sphi %s781_s24, %s1055_s24   ;;  %s731_s23 = sphi %s779_s23, %s1054_s23   ;;  %s727_s22 = sphi %s777_s22, %s1053_s22   ;;  %s723_s21 = sphi %s775_s21, %s1052_s21  }
   0x5   : > { %s800_s27 = sadd.s32 1, %s735_s24   ;;  %s138_s28 = sadd.s32 1, %s731_s23 }
   0x6   : > { %s135_s29 = ssub.s32 %s735_s24, %s800_s27  ;;  %p148_p0 = scmp.ne.s32.totalorder %s731_s23, %s727_s22 }
   0x7   : > { %p136_p1 = scmp.eq.s32.totalorder %s135_s29, 0  ;;  %p1047_p2 = scmp.eq.s32.totalorder %s796_s25, 5 }
   0x8   : > { %p154_p3 = scmp.ne.s32.totalorder %s727_s22, %s723_s21  ;;  %p155_p4 = scmp.eq.s32.totalorder %s580_s26, 5 }
   0x9   : > { %s811_s30 = scalar_select %p136_p1, %s731_s23, %s138_s28  }
   0xa   : > { %p815_p5 = por %p1047_p2, %p148_p0  ;;  %p819_p6 = por %p155_p4, %p154_p3 }
   0xb   : > { %p583_p7 = scmp.ge.s32.totalorder %s735_s24, 1  ;;  %p213_p8 = scmp.lt.s32.totalorder %s735_s24, 7 }
   0xd   : > { %p214_p9 = pnand %p583_p7, %p213_p8 }
   0xe   : > { %s237_s9 = sand.u32 (!%p214_p9), 1, %s727_s22   ;;  %p242_p10 = scmp.lt.s32.totalorder (!%p214_p9), %s796_s25, 5 }
   0xf   : > { %217 = sbr.rel (%p214_p9) target bundleno = 591 (0x24f), region = 40  ;;  %s829_s10 = sshll.u32 (!%p214_p9), %s237_s9, 3 }
  0x10   : > { %s239_s16 = scalar_lea.vmem (!%p214_p9), [#allocation2], %s829_s10  ;;  %p586_p11 = scmp.ne.s32.totalorder (!%p214_p9), %s796_s25, 0 }
  0x14   : > { %s243_s11 = scalar_select %p242_p10, %s796_s25, 5 }
  0x15   : > { %249 = sbr.rel (%p586_p11) target bundleno = 28 (0x1c), region = 44 }
  0x16   : > { %s585_s12 = sshll.u32 %s243_s11, 3 }
  0x17   : > { %s835_s15 = scalar_lea.vmem %s1040_s0, %s585_s12 }
  0x1a   : > { %v250_v0 = vld [vmem:[%s1041_s1] sm:$0xff] }
  0x1b   : > { %251 = vst [vmem:[#allocation4] sm:$0xff] %v250_v0 }
  0x1c PF: > { %v301_v1 = vld [vmem:[%s1043_s3 + $0xf8] sm:$0xff]  ;;  %v300_v2 = vld [vmem:[%s1043_s3 + $0xf0] sm:$0xff]  ;;  %v299_v3 = vld [vmem:[%s1043_s3 + $0xe8] sm:$0xff]  ;;  %v737_v5 = vmov 0.0   ;;  %vm377_vm0 = vcmask 1040384   ;;  %vm373_vm1 = vcmask 465920   ;;  %v457_v52 = vlaneseq }
  0x1d   : > { %302 = vmatprep.subr.mxu0 %v301_v1  ;;  %v298_v4 = vld [vmem:[%s1043_s3 + $0xe0] sm:$0xff]  ;;  %448 = vmatprep.mubr.f32.mxu1 %v737_v5  ;;  %v297_v6 = vld [vmem:[%s1043_s3 + $0xd8] sm:$0xff]  ;;  %v296_v7 = vld [vmem:[%s1043_s3 + $0xd0] sm:$0xff]  ;;  %s738_s14 = smov [#allocation4]  }
  0x1e   : > { %303 = vmatpush1.msra.mxu0 %v300_v2  ;;  %366 = vmatprep.mubr.f32.mxu0 %v737_v5  ;;  %v295_v8 = vld [vmem:[%s1043_s3 + $0xc8] sm:$0xff]  ;;  %v294_v9 = vld [vmem:[%s1043_s3 + $0xc0] sm:$0xff]  ;;  %v269_v10 = vld [vmem:[%s1042_s2 + $0x78] sm:$0x1]  ;;  %v458_v53 = vshrl.u32 %v457_v52, 7  ;;  %v470_v60 = vand.u32 127, %v457_v52 }
  0x1f   : > { %304 = vmatprep.subr.mxu0 %v299_v3  ;;  %v268_v11 = vld [vmem:[%s1042_s2 + $0x70] sm:$0x1]  ;;  %v293_v12 = vld [vmem:[%s1043_s3 + $0xb8] sm:$0xff]  ;;  %587 = vmatprep.subr.msk.mxu1 %vm377_vm0, %v269_v10  ;;  %v267_v13 = vld [vmem:[%s1042_s2 + $0x68] sm:$0xff]  ;;  %s510_s17 = sshll.u32 %s738_s14, 4  ;;  %s511_s17 = int_to_ptr.vmem [resolvable:$true] %s510_s17 }
  0x20   : > { %305 = vmatpush1.msra.mxu0 %v298_v4  ;;  %v292_v14 = vld [vmem:[%s1043_s3 + $0xb0] sm:$0xff]  ;;  %588 = vmatpush1.msk.msra.mxu1 %vm377_vm0, %v268_v11  ;;  %v266_v15 = vld [vmem:[%s1042_s2 + $0x60] sm:$0xff]  ;;  %v265_v16 = vld [vmem:[%s1042_s2 + $0x58] sm:$0xff]  ;;  %v459_v54 = vsub.s32 0, %v458_v53  ;;  %v463_v56 = vsub.s32 1, %v458_v53  ;;  %vm471_vm2 = vcmp.lt.s32.totalorder %v470_v60, 18  ;;  %p654_p1 = scmp.lt.s32.totalorder %s511_s17, %s511_s17 }
  0x21   : > { %306 = vmatprep.subr.mxu0 %v297_v6  ;;  %v291_v17 = vld [vmem:[%s1043_s3 + $0xa8] sm:$0xff]  ;;  %402 = vmatprep.subr.mxu1 %v267_v13  ;;  %v264_v18 = vld [vmem:[%s1042_s2 + $0x50] sm:$0xff]  ;;  %v290_v19 = vld [vmem:[%s1043_s3 + $0xa0] sm:$0xff]  ;;  %s647_s18 = scalar_lea.vmem %s511_s17, 128 }
  0x22   : > { %307 = vmatpush1.msra.mxu0 %v296_v7  ;;  %403 = vmatpush1.msra.mxu1 %v266_v15  ;;  %v263_v20 = vld [vmem:[%s1042_s2 + $0x48] sm:$0xff]  ;;  %v289_v21 = vld [vmem:[%s1043_s3 + $0x98] sm:$0xff]  ;;  %v262_v22 = vld [vmem:[%s1042_s2 + $0x40] sm:$0xff]  ;;  %p648_p12 = scmp.ne.s32.totalorder %s511_s17, %s647_s18  ;;  %p655_p3 = scmp.lt.s32.totalorder %s647_s18, %s647_s18 }
  0x23   : > { %308 = vmatprep.subr.mxu0 %v295_v8  ;;  %404 = vmatprep.subr.mxu1 %v265_v16  ;;  %v288_v23 = vld [vmem:[%s1043_s3 + $0x90] sm:$0xff]  ;;  %v261_v24 = vld [vmem:[%s1042_s2 + $0x38] sm:$0xff]  ;;  %v287_v25 = vld [vmem:[%s1043_s3 + $0x88] sm:$0xff] }
  0x24   : > { %309 = vmatpush1.msra.mxu0 %v294_v9  ;;  %405 = vmatpush1.msra.mxu1 %v264_v18  ;;  %v260_v26 = vld [vmem:[%s1042_s2 + $0x30] sm:$0xff]  ;;  %v286_v27 = vld [vmem:[%s1043_s3 + $0x80] sm:$0xff]  ;;  %v259_v28 = vld [vmem:[%s1042_s2 + $0x28] sm:$0xff]  ;;  %p649_p13 = pnand %p648_p12, %p1047_p2  ;;  %p656_p4 = por %p655_p3, %p654_p1 }
  0x25   : > { %310 = vmatprep.subr.mxu0 %v293_v12  ;;  %406 = vmatprep.subr.mxu1 %v263_v20  ;;  %v285_v29 = vld [vmem:[%s1043_s3 + $0x78] sm:$0xff]  ;;  %v258_v30 = vld [vmem:[%s1042_s2 + $0x20] sm:$0xff]  ;;  %v284_v31 = vld [vmem:[%s1043_s3 + $0x70] sm:$0xff] }
  0x26   : > { %311 = vmatpush1.msra.mxu0 %v292_v14  ;;  %407 = vmatpush1.msra.mxu1 %v262_v22  ;;  %v257_v32 = vld [vmem:[%s1042_s2 + $0x18] sm:$0xff]  ;;  %v283_v33 = vld [vmem:[%s1043_s3 + $0x68] sm:$0xff]  ;;  %v256_v34 = vld [vmem:[%s1042_s2 + $0x10] sm:$0xff]  ;;  %p650_p0 = pneg %p649_p13 }
  0x27   : > { %312 = vmatprep.subr.mxu0 %v291_v17  ;;  %408 = vmatprep.subr.mxu1 %v261_v24  ;;  %v282_v35 = vld [vmem:[%s1043_s3 + $0x60] sm:$0xff]  ;;  %v255_v36 = vld [vmem:[%s1042_s2 + $0x8] sm:$0xff]  ;;  %v281_v37 = vld [vmem:[%s1043_s3 + $0x58] sm:$0xff] }
  0x28   : > { %313 = vmatpush1.msra.mxu0 %v290_v19  ;;  %409 = vmatpush1.msra.mxu1 %v260_v26  ;;  %v254_v38 = vld [vmem:[%s1042_s2] sm:$0xff]  ;;  %v280_v39 = vld [vmem:[%s1043_s3 + $0x50] sm:$0xff]  ;;  %v279_v41 = vld [vmem:[%s1043_s3 + $0x48] sm:$0xff]  ;;  %p657_p7 = pnand %p656_p4, %p650_p0 }
  0x29   : > { %314 = vmatprep.subr.mxu0 %v289_v21  ;;  %410 = vmatprep.subr.mxu1 %v259_v28  ;;  %v252_v40 = vld [vmem:[%s835_s15] sm:$0xff]  ;;  %v277_v43 = vld [vmem:[%s1043_s3 + $0x38] sm:$0xff]  ;;  %v276_v44 = vld [vmem:[%s1043_s3 + $0x30] sm:$0xff] }
  0x2a   : > { %315 = vmatpush1.msra.mxu0 %v288_v23  ;;  %411 = vmatpush1.msra.mxu1 %v258_v30  ;;  %v278_v42 = vld [vmem:[%s1043_s3 + $0x40] sm:$0xff]  ;;  %v275_v45 = vld [vmem:[%s1043_s3 + $0x28] sm:$0xff]  ;;  %v273_v47 = vld [vmem:[%s1043_s3 + $0x18] sm:$0xff] }
  0x2b   : > { %316 = vmatprep.subr.mxu0 %v287_v25  ;;  %412 = vmatprep.subr.mxu1 %v257_v32  ;;  %v274_v46 = vld [vmem:[%s1043_s3 + $0x20] sm:$0xff]  ;;  %v272_v48 = vld [vmem:[%s1043_s3 + $0x10] sm:$0xff]  ;;  %v271_v49 = vld [vmem:[%s1043_s3 + $0x8] sm:$0xff] }
  0x2c   : > { %317 = vmatpush1.msra.mxu0 %v286_v27  ;;  %413 = vmatpush1.msra.mxu1 %v256_v34  ;;  %v270_v50 = vld [vmem:[%s1043_s3] sm:$0xff]  ;;  %v253_v51 = vld [vmem:[#allocation4] sm:$0xff] }
  0x2d   : > { %318 = vmatprep.subr.mxu0 %v285_v29  ;;  %414 = vmatprep.subr.mxu1 %v255_v36  ;;  %v455_v55 = vld [vmem:[%s1044_s4] sm:$0x3] }
  0x2e   : > { %319 = vmatpush1.msra.mxu0 %v284_v31  ;;  %415 = vmatpush1.msra.mxu1 %v254_v38  ;;  %v460_v58 = vrot.slane %v455_v55, %v459_v54  ;;  %v464_v62 = vrot.slane %v455_v55, %v463_v56 }
  0x2f   : > { %320 = vmatprep.subr.mxu0 %v283_v33  ;;  %589 = vmatmul.mubr.msk.f32.vlgmr.msra.gmra.mxu1 %vm373_vm1, %v252_v40 }
  0x30   : > { %321 = vmatpush1.msra.mxu0 %v282_v35 }
  0x31   : > { %322 = vmatprep.subr.mxu0 %v281_v37 }
  0x32   : > { %323 = vmatpush1.msra.mxu0 %v280_v39 }
  0x33   : > { %324 = vmatprep.subr.mxu0 %v279_v41 }
  0x34   : > { %325 = vmatpush1.msra.mxu0 %v278_v42 }
  0x35   : > { %326 = vmatprep.subr.mxu0 %v277_v43 }
  0x36   : > { %327 = vmatpush1.msra.mxu0 %v276_v44 }
  0x37   : > { %328 = vmatprep.subr.mxu0 %v275_v45 }
  0x38   : > { %329 = vmatpush1.msra.mxu0 %v274_v46 }
  0x39   : > { %330 = vmatprep.subr.mxu0 %v273_v47 }
  0x3a   : > { %331 = vmatpush1.msra.mxu0 %v272_v48 }
  0x3b   : > { %332 = vmatprep.subr.mxu0 %v271_v49 }
  0x3c   : > { %333 = vmatpush1.msra.mxu0 %v270_v50 }
  0x3d   : > { %367 = vmatmul.mubr.f32.vlgmr.msra.gmra.mxu0 %v253_v51 }
  0xef   : > { %v450_v57 = vpop.f32.mrf.mxu1 }
  0xf1   : > { %v452_v63 = vpop.f32.mrf.mxu1 }
  0xfd   : > { %v368_v59 = vpop.f32.mrf.mxu0 }
  0xfe   : > { %v451_v61 = vadd.f32 %v450_v57, %v368_v59 }
  0xff   : > { %v370_v0 = vpop.f32.mrf.mxu0 }
 0x100   : > { %v453_v1 = vadd.f32 %v452_v63, %v370_v0  ;;  %v467_v2 = vadd.f32 %v460_v58, %v451_v61 }
 0x102   : > { %v468_v3 = vadd.f32 %v464_v62, %v453_v1  ;;  %484 = vst [vmem:[#allocation4] sm:$0xff] %v467_v2 }
 0x104   : > { %v472_v4 = vsel %vm471_vm2, %v468_v3, -1e+30 }
 0x105   : > { %473 = vmax.xlane.f32.xlu0 %v472_v4 }
 0x18e   : > { %v474_v5 = vpop.xlane.xlu0 %473 }
 0x18f   : > { %v475_v6 = vsub.f32 %v472_v4, %v474_v5 }
 0x191   : > { %v476_v7 = vmul.f32 1.442695, %v475_v6 }
 0x193   : > { %643 = vpow2.f32 %v476_v7 }
 0x1a0   : > { %v644_v8 = vpop.eup %643 }
 0x1a1   : > { %478 = vadd.xlane.f32.xlu0 %v644_v8 }
 0x1a2   : > { %660 = shalt.err (!%p657_p7)
}
 0x1a3   : > { %598 = dma.vmem_to_hbm [thread:$0]  (%p1047_p2), %s511_s17, 128, %s1046_s6, [#allocation5]  }
 0x1a4   : > { %s591_s26 = sshll.u32 %s796_s25, 7  ;;  %s499_s28 = sshll.u32 %s239_s16, 4  ;;  %s500_s28 = int_to_ptr.vmem [resolvable:$true] %s499_s28 }
 0x1a5   : > { %s497_s11 = scalar_lea.hbm %s1045_s5, %s591_s26  ;;  %s486_s12 = scalar_lea.sflag [#allocation3], %s237_s9 }
 0x1a6   : > { %s671_s13 = scalar_lea.vmem %s500_s28, 128  ;;  %s739_s14 = smov [#allocation2]  }
 0x1a7   : > { %p672_p8 = scmp.ne.s32.totalorder %s500_s28, %s671_s13  ;;  %s675_s17 = sshll.u32 %s739_s14, 4  ;;  %s676_s17 = int_to_ptr.vmem [resolvable:$false] %s675_s17 }
 0x1a8   : > { %s677_s18 = scalar_lea.vmem %s676_s17, 256  ;;  %p678_p11 = scmp.lt.s32.totalorder %s500_s28, %s676_s17 }
 0x1a9   : > { %p673_p9 = pnand %p672_p8, %p815_p5  ;;  %p679_p12 = scmp.lt.s32.totalorder %s677_s18, %s671_s13 }
 0x1ab   : > { %p674_p10 = pneg %p673_p9  ;;  %p680_p13 = por %p679_p12, %p678_p11 }
 0x1ad   : > { %p681_p0 = pnand %p680_p13, %p674_p10 }
 0x22a   : > { %v479_v9 = vpop.xlane.xlu0 %478 }
 0x22b   : > { %645 = vlog2.f32 %v479_v9 }
 0x238   : > { %v646_v10 = vpop.eup %645 }
 0x239   : > { %v481_v11 = vmul.f32 0.6931472, %v646_v10 }
 0x23b   : > { %v482_v12 = vsub.f32 %v475_v6, %v481_v11 }
 0x23d   : > { %483 = vst [vmem:[%s239_s16] sm:$0xff] %v482_v12 }
 0x23e   : > { %684 = shalt.err (!%p681_p0)
}
 0x23f   : > { %s685_s19 = scalar_lea.hbm %s497_s11, 128  ;;  %s689_s16 = scalar_lea.hbm %s1045_s5, 768 }
 0x240   : > { %p686_p1 = scmp.ne.s32.totalorder %s497_s11, %s685_s19  ;;  %p690_p7 = scmp.lt.s32.totalorder %s497_s11, %s1045_s5 }
 0x241   : > { %p691_p8 = scmp.lt.s32.totalorder %s689_s16, %s685_s19 }
 0x242   : > { %p687_p3 = pnand %p686_p1, %p815_p5 }
 0x243   : > { %p692_p9 = por %p691_p8, %p690_p7 }
 0x244   : > { %p688_p4 = pneg %p687_p3 }
 0x246   : > { %p693_p2 = pnand %p692_p9, %p688_p4 }
 0x248   : > { %696 = shalt.err (!%p693_p2)
}
 0x249   : > { %596 = dma.vmem_to_hbm [thread:$0]  (%p815_p5), %s500_s28, 128, %s497_s11, %s486_s12  }
 0x24a   : > { %p1050_p10 = scmp.eq.s32.totalorder %s796_s25, 5 }
 0x24c   : > { %714 = dma.done.wait (%p1050_p10), [#allocation5], 128   ;;  %p1051_p11 = pmov %p1050_p10 }
 0x24e   : > { %716 = vsyncadd (%p1051_p11), [#allocation5], 4294967168 }
 0x24f PF: > { %p608_p12 = scmp.ge.s32.totalorder %s735_s24, 2  ;;  %s526_s29 = sand.u32 1, %s723_s21  }
 0x250   : > { %s527_s15 = scalar_lea.sflag [#allocation3], %s526_s29 }
 0x251   : > { %p603_p13 = pnand %p608_p12, %p819_p6 }
 0x253   : > { %p604_p0 = pneg %p603_p13 }
 0x255   : > { %718 = dma.done.wait (%p604_p0), %s527_s15, 128  }
 0x256   : > { %720 = vsyncadd (%p604_p0), %s527_s15, 4294967168  ;;  %p18_p2 = scmp.ge.s32.totalorder %s800_s27, 8   ;;  %s1052_s21 = smov %s727_s22 }
 0x257   : > { %s1053_s22 = smov %s731_s23  ;;  %s1054_s23 = smov %s811_s30 }
 0x258   : > { %s1055_s24 = smov %s800_s27  ;;  %20 = sbr.rel (!%p18_p2) target bundleno = 4 (0x4), region = 87 }
 0x25d   :  { %532 = vsyncpa [#allocation3], 1 }
 0x25e   :  { %534 = vsyncpa [#allocation3 + $0x1], 1 }
 0x25f   :  { %535 = vsyncpa [#allocation5], 1 }

</bundles_post_ra>
